<compile_context>
chip_gen: v5e
topology: v5e:2x2
jax: 0.10.0
libtpu: 0.0.40
codegen_flags: <defaults>
</compile_context>

<pallas_src>
import functools
import math

import numpy as np
import jax
import jax.numpy as jnp
from jax import lax
from jax.experimental import pallas as pl
from jax.experimental.pallas import tpu as pltpu


def _round_up(x, m):
    return -(-x // m) * m


def _fps_kernel(coords_ref, planes_ref, out_ref, *, n_points, n_dims, n_samples):
    # coords_ref: (B, 8, Csm)      f32 SMEM (whole array resident) -- coord d of
    #             point i at [b, d, i]; used for O(1) selected-point lookup.
    # planes_ref: (1, D+1, R, C)   f32 VMEM -- D coordinate planes + ||p||^2 plane,
    #             point i folded to (i // C, i % C).
    # out_ref   : (1, Ro, Co)      i32 VMEM -- selected indices scattered at flat
    #             positions 0..M-1 (lane-dense output block).
    b = pl.program_id(0)
    _, _, R, C = planes_ref.shape
    _, Ro, Co = out_ref.shape

    # Load the per-graph planes once; they stay in vregs across the serial loop.
    planes = [planes_ref[0, d] for d in range(n_dims)]           # each (R, C)
    ppsq = planes_ref[0, n_dims]                                  # (R, C)

    # Flat point id of every (sublane, lane) slot; pad slots get -inf so they
    # can never win the farthest-point argmax.
    pid = (lax.broadcasted_iota(jnp.int32, (R, C), 0) * C
           + lax.broadcasted_iota(jnp.int32, (R, C), 1))
    mind0 = jnp.where(pid < n_points,
                      jnp.float32(jnp.inf), jnp.float32(-jnp.inf))

    oflat = (lax.broadcasted_iota(jnp.int32, (Ro, Co), 0) * Co
             + lax.broadcasted_iota(jnp.int32, (Ro, Co), 1))
    sel0 = jnp.zeros((Ro, Co), jnp.int32)

    def body(m, carry):
        cur, mind, sel = carry
        # Record the currently selected point (single-vreg scatter, off the
        # critical argmax chain).
        sel = jnp.where(oflat == m, cur, sel)

        # Selected point's coordinates: scalar SMEM loads (no cross-lane reduce).
        cx = [coords_ref[b, d, cur] for d in range(n_dims)]
        csq = cx[0] * cx[0]
        dot = planes[0] * cx[0]
        for d in range(1, n_dims):
            csq = csq + cx[d] * cx[d]
            dot = dot + planes[d] * cx[d]

        # ||p - c||^2 = ||p||^2 - 2 p.c + ||c||^2 : pure full-lane VPU work.
        dist = (ppsq - 2.0 * dot) + csq
        mind = jnp.minimum(mind, dist)

        # Exact argmax with smallest-index tie-break (matches np.argmax).
        far = jnp.max(mind)
        cand = jnp.where(mind >= far, pid, jnp.int32(R * C))
        nxt = jnp.min(cand).astype(jnp.int32)
        return nxt, mind, sel

    # random_start=False -> always start from point 0 of each graph.
    _, _, sel = lax.fori_loop(0, n_samples, body, (jnp.int32(0), mind0, sel0))
    out_ref[0] = sel


def fps_indices(pos, ratio=0.5):
    """pos: (B, N, D) float32.  Returns (B, M) int32 per-example FPS indices."""
    B, N, D = pos.shape
    M = int(math.ceil(ratio * N))

    # Dense fold of the N points onto (sublane, lane): R=8 rows, lane-padded cols.
    R = 8
    C = _round_up(max(1, -(-N // R)), 128)
    n_slots = R * C

    # Lane-dense output tile holding the M selected indices.
    Ro = 8
    Co = _round_up(max(1, -(-M // Ro)), 128)

    posf = pos.astype(jnp.float32)
    pt = jnp.transpose(posf, (0, 2, 1))                           # (B, D, N)

    # VMEM input: D coordinate planes + precomputed squared-norm plane.
    planes = jnp.pad(pt, ((0, 0), (0, 0), (0, n_slots - N)))      # (B, D, n_slots)
    planes = planes.reshape(B, D, R, C)
    ppsq = jnp.sum(planes * planes, axis=1, keepdims=True)        # (B, 1, R, C)
    planes = jnp.concatenate([planes, ppsq], axis=1)              # (B, D+1, R, C)

    # Small SMEM coordinate table for scalar lookup of the selected point.
    Dr = _round_up(D, 8)
    Csm = _round_up(N, 128)
    coords = jnp.pad(pt, ((0, 0), (0, Dr - D), (0, Csm - N)))     # (B, 8, Csm)

    kernel = functools.partial(_fps_kernel,
                               n_points=N, n_dims=D, n_samples=M)

    out = pl.pallas_call(
        kernel,
        out_shape=jax.ShapeDtypeStruct((B, Ro, Co), jnp.int32),
        grid_spec=pltpu.PrefetchScalarGridSpec(
            num_scalar_prefetch=0,
            grid=(B,),
            in_specs=[
                # whole coord table resident in SMEM (read-only, tiny)
                pl.BlockSpec(memory_space=pltpu.MemorySpace.SMEM),
                pl.BlockSpec((1, D + 1, R, C), lambda b: (b, 0, 0, 0)),
            ],
            out_specs=pl.BlockSpec((1, Ro, Co), lambda b: (b, 0, 0)),
        ),
        compiler_params=pltpu.CompilerParams(
            dimension_semantics=("parallel",)),
    )(coords, planes)

    return out.reshape(B, Ro * Co)[:, :M]


def farthest_sampling_layer(x, pos, batch_vec, ratio=0.5):
    """Mirrors FarthestSamplingLayer.forward for B equal-sized graphs.
    x: (B, N, F), pos: (B, N, D), batch_vec: (B, N) int32.
    Returns (new_x, new_pos, new_batch) gathered at the FPS indices."""
    idx = fps_indices(pos, ratio=ratio)                           # (B, M)
    new_pos = jnp.take_along_axis(pos, idx[:, :, None], axis=1)
    new_x = jnp.take_along_axis(x, idx[:, :, None], axis=1)
    new_batch = jnp.take_along_axis(batch_vec, idx, axis=1)
    return new_x, new_pos, new_batch


def _fps_ref(pos_np, ratio):
    """Pure-numpy reference of torch_geometric fps(random_start=False)."""
    B, N, _ = pos_np.shape
    M = int(math.ceil(ratio * N))
    out = np.zeros((B, M), np.int32)
    for b in range(B):
        mind = np.full((N,), np.inf, np.float64)
        cur = 0
        for m in range(M):
            out[b, m] = cur
            d = ((pos_np[b] - pos_np[b, cur]) ** 2).sum(-1)
            mind = np.minimum(mind, d)
            cur = int(np.argmax(mind))
    return out


if __name__ == "__main__":
    B, N, D, F = 2, 64, 3, 4
    ratio = 0.5

    key = jax.random.PRNGKey(0)
    k_pos, k_x = jax.random.split(key)
    pos = jax.random.normal(k_pos, (B, N, D), dtype=jnp.float32)
    x = jax.random.normal(k_x, (B, N, F), dtype=jnp.float32)
    batch_vec = jnp.broadcast_to(jnp.arange(B, dtype=jnp.int32)[:, None], (B, N))

    idx = jax.block_until_ready(fps_indices(pos, ratio=ratio))
    new_x, new_pos, new_batch = farthest_sampling_layer(x, pos, batch_vec, ratio=ratio)
    jax.block_until_ready((new_x, new_pos, new_batch))

    # correctness check against the pure-numpy FPS reference
    idx_ref = _fps_ref(np.asarray(pos, dtype=np.float64), ratio)
    assert idx.shape == (B, int(math.ceil(ratio * N)))
    np.testing.assert_array_equal(np.asarray(idx), idx_ref)
    np.testing.assert_allclose(
        np.asarray(new_pos),
        np.take_along_axis(np.asarray(pos), idx_ref[:, :, None], axis=1),
        rtol=0, atol=0)

    print("KERNEL_OK")
</pallas_src>

<mosaic_0001>
module attributes {stable_mosaic.version = 11 : i64} {
  func.func @_fps_kernel(%arg0: i32, %arg1: memref<2x8x128xf32, #tpu.memory_space<smem>>, %arg2: memref<1x4x8x128xf32, #tpu.memory_space<vmem>>, %arg3: memref<1x8x128xi32, #tpu.memory_space<vmem>>) attributes {dimension_semantics = [#tpu.dimension_semantics<parallel>], iteration_bounds = array<i64: 2>, scalar_prefetch = 0 : i64, scratch_operands = 0 : i64, tpu.core_type = #tpu.core_type<tc>, window_params = [{transform_indices = @transform_0, window_bounds = array<i64: 2, 8, 128>}, {transform_indices = @transform_1, window_bounds = array<i64: 1, 4, 8, 128>}, {transform_indices = @transform_2, window_bounds = array<i64: 1, 8, 128>}]} {
    %c0 = arith.constant 0 : index
    %c0_0 = arith.constant 0 : index
    %c0_1 = arith.constant 0 : index
    %c0_2 = arith.constant 0 : index
    %0 = vector.load %arg2[%c0, %c0_0, %c0_1, %c0_2] : memref<1x4x8x128xf32, #tpu.memory_space<vmem>>, vector<1x1x8x128xf32>
    %1 = vector.shape_cast %0 : vector<1x1x8x128xf32> to vector<8x128xf32>
    %c0_3 = arith.constant 0 : index
    %c1 = arith.constant 1 : index
    %c0_4 = arith.constant 0 : index
    %c0_5 = arith.constant 0 : index
    %2 = vector.load %arg2[%c0_3, %c1, %c0_4, %c0_5] : memref<1x4x8x128xf32, #tpu.memory_space<vmem>>, vector<1x1x8x128xf32>
    %3 = vector.shape_cast %2 : vector<1x1x8x128xf32> to vector<8x128xf32>
    %c0_6 = arith.constant 0 : index
    %c2 = arith.constant 2 : index
    %c0_7 = arith.constant 0 : index
    %c0_8 = arith.constant 0 : index
    %4 = vector.load %arg2[%c0_6, %c2, %c0_7, %c0_8] : memref<1x4x8x128xf32, #tpu.memory_space<vmem>>, vector<1x1x8x128xf32>
    %5 = vector.shape_cast %4 : vector<1x1x8x128xf32> to vector<8x128xf32>
    %c0_9 = arith.constant 0 : index
    %c3 = arith.constant 3 : index
    %c0_10 = arith.constant 0 : index
    %c0_11 = arith.constant 0 : index
    %6 = vector.load %arg2[%c0_9, %c3, %c0_10, %c0_11] : memref<1x4x8x128xf32, #tpu.memory_space<vmem>>, vector<1x1x8x128xf32>
    %7 = vector.shape_cast %6 : vector<1x1x8x128xf32> to vector<8x128xf32>
    %8 = tpu.iota {dimensions = array<i32: 0>} : vector<8x128xi32>
    %c128_i32 = arith.constant 128 : i32
    %9 = vector.broadcast %c128_i32 : i32 to vector<8x128xi32>
    %10 = arith.muli %8, %9 : vector<8x128xi32>
    %11 = tpu.iota {dimensions = array<i32: 1>} : vector<8x128xi32>
    %12 = arith.addi %10, %11 : vector<8x128xi32>
    %c64_i32 = arith.constant 64 : i32
    %13 = vector.broadcast %c64_i32 : i32 to vector<8x128xi32>
    %14 = arith.cmpi slt, %12, %13 : vector<8x128xi32>
    %cst = arith.constant 0x7F800000 : f32
    %cst_12 = arith.constant 0xFF800000 : f32
    %15 = vector.broadcast %cst : f32 to vector<8x128xf32>
    %16 = vector.broadcast %cst_12 : f32 to vector<8x128xf32>
    %17 = arith.select %14, %15, %16 : vector<8x128xi1>, vector<8x128xf32>
    %18 = tpu.iota {dimensions = array<i32: 0>} : vector<8x128xi32>
    %c128_i32_13 = arith.constant 128 : i32
    %19 = vector.broadcast %c128_i32_13 : i32 to vector<8x128xi32>
    %20 = arith.muli %18, %19 : vector<8x128xi32>
    %21 = tpu.iota {dimensions = array<i32: 1>} : vector<8x128xi32>
    %22 = arith.addi %20, %21 : vector<8x128xi32>
    %c0_i32 = arith.constant 0 : i32
    %23 = vector.broadcast %c0_i32 : i32 to vector<8x128xi32>
    %c0_i32_14 = arith.constant 0 : i32
    %c0_i32_15 = arith.constant 0 : i32
    %c32_i32 = arith.constant 32 : i32
    %24 = arith.addi %c0_i32_15, %c32_i32 : i32
    %c1_i32 = arith.constant 1 : i32
    %25:3 = scf.for %arg4 = %c0_i32_15 to %24 step %c1_i32 iter_args(%arg5 = %c0_i32_14, %arg6 = %17, %arg7 = %23) -> (i32, vector<8x128xf32>, vector<8x128xi32>)  : i32 {
      %29 = vector.broadcast %arg4 : i32 to vector<8x128xi32>
      %30 = arith.cmpi eq, %22, %29 : vector<8x128xi32>
      %31 = vector.broadcast %arg5 : i32 to vector<8x128xi32>
      %32 = arith.select %30, %31, %arg7 : vector<8x128xi1>, vector<8x128xi32>
      %33 = arith.index_cast %arg0 : i32 to index
      %c0_20 = arith.constant 0 : index
      %34 = arith.index_cast %arg5 : i32 to index
      %35 = memref.load %arg1[%33, %c0_20, %34] : memref<2x8x128xf32, #tpu.memory_space<smem>>
      %36 = arith.index_cast %arg0 : i32 to index
      %c1_21 = arith.constant 1 : index
      %37 = arith.index_cast %arg5 : i32 to index
      %38 = memref.load %arg1[%36, %c1_21, %37] : memref<2x8x128xf32, #tpu.memory_space<smem>>
      %39 = arith.index_cast %arg0 : i32 to index
      %c2_22 = arith.constant 2 : index
      %40 = arith.index_cast %arg5 : i32 to index
      %41 = memref.load %arg1[%39, %c2_22, %40] : memref<2x8x128xf32, #tpu.memory_space<smem>>
      %42 = arith.mulf %35, %35 : f32
      %43 = vector.broadcast %35 : f32 to vector<8x128xf32>
      %44 = arith.mulf %1, %43 : vector<8x128xf32>
      %45 = arith.mulf %38, %38 : f32
      %46 = arith.addf %42, %45 : f32
      %47 = vector.broadcast %38 : f32 to vector<8x128xf32>
      %48 = arith.mulf %3, %47 : vector<8x128xf32>
      %49 = arith.addf %44, %48 : vector<8x128xf32>
      %50 = arith.mulf %41, %41 : f32
      %51 = arith.addf %46, %50 : f32
      %52 = vector.broadcast %41 : f32 to vector<8x128xf32>
      %53 = arith.mulf %5, %52 : vector<8x128xf32>
      %54 = arith.addf %49, %53 : vector<8x128xf32>
      %cst_23 = arith.constant 2.000000e+00 : f32
      %55 = vector.broadcast %cst_23 : f32 to vector<8x128xf32>
      %56 = arith.mulf %55, %54 : vector<8x128xf32>
      %57 = arith.subf %7, %56 : vector<8x128xf32>
      %58 = vector.broadcast %51 : f32 to vector<8x128xf32>
      %59 = arith.addf %57, %58 : vector<8x128xf32>
      %60 = arith.minimumf %arg6, %59 : vector<8x128xf32>
      %61 = vector.shape_cast %60 : vector<8x128xf32> to vector<1x8x128xf32>
      %cst_24 = arith.constant dense<0xFF800000> : vector<1xf32>
      %62 = vector.multi_reduction <maximumf>, %61, %cst_24 [1, 2] : vector<1x8x128xf32> to vector<1xf32>
      %63 = vector.shape_cast %62 : vector<1xf32> to vector<1x1x1xf32>
      %64 = vector.extract %63[0, 0, 0] : f32 from vector<1x1x1xf32>
      %65 = vector.broadcast %64 : f32 to vector<8x128xf32>
      %66 = arith.cmpf oge, %60, %65 : vector<8x128xf32>
      %c1024_i32 = arith.constant 1024 : i32
      %67 = vector.broadcast %c1024_i32 : i32 to vector<8x128xi32>
      %68 = arith.select %66, %12, %67 : vector<8x128xi1>, vector<8x128xi32>
      %69 = vector.shape_cast %68 : vector<8x128xi32> to vector<1x8x128xi32>
      %cst_25 = arith.constant dense<2147483647> : vector<1xi32>
      %70 = vector.multi_reduction <minsi>, %69, %cst_25 [1, 2] : vector<1x8x128xi32> to vector<1xi32>
      %71 = vector.shape_cast %70 : vector<1xi32> to vector<1x1x1xi32>
      %72 = vector.extract %71[0, 0, 0] : i32 from vector<1x1x1xi32>
      scf.yield %72, %60, %32 : i32, vector<8x128xf32>, vector<8x128xi32>
    }
    %c32_i32_16 = arith.constant 32 : i32
    %c0_17 = arith.constant 0 : index
    %c0_18 = arith.constant 0 : index
    %c0_19 = arith.constant 0 : index
    %26 = vector.load %arg3[%c0_17, %c0_18, %c0_19] : memref<1x8x128xi32, #tpu.memory_space<vmem>>, vector<1x8x128xi32>
    %27 = vector.shape_cast %26 : vector<1x8x128xi32> to vector<8x128xi32>
    %28 = vector.shape_cast %25#2 : vector<8x128xi32> to vector<1x8x128xi32>
    tpu.vector_store %arg3[%c0_17, %c0_18, %c0_19], %28 {strides = array<i32>} : memref<1x8x128xi32, #tpu.memory_space<vmem>>, vector<1x8x128xi32>,
    return
  }
  func.func @transform_0(%arg0: i32) -> (i32, i32, i32) {
    %c0_i32 = arith.constant 0 : i32
    %c0_i32_0 = arith.constant 0 : i32
    %c0_i32_1 = arith.constant 0 : i32
    %c0_i32_2 = arith.constant 0 : i32
    return %c0_i32, %c0_i32_0, %c0_i32_1 : i32, i32, i32
  }
  func.func @transform_1(%arg0: i32) -> (i32, i32, i32, i32) {
    %c0_i32 = arith.constant 0 : i32
    %c0_i32_0 = arith.constant 0 : i32
    %c0_i32_1 = arith.constant 0 : i32
    %c0_i32_2 = arith.constant 0 : i32
    return %arg0, %c0_i32, %c0_i32_0, %c0_i32_1 : i32, i32, i32, i32
  }
  func.func @transform_2(%arg0: i32) -> (i32, i32, i32) {
    %c0_i32 = arith.constant 0 : i32
    %c0_i32_0 = arith.constant 0 : i32
    %c0_i32_1 = arith.constant 0 : i32
    return %arg0, %c0_i32, %c0_i32_0 : i32, i32, i32
  }
}

</mosaic_0001>

<bundles_post_ra>
// kernel: tpu_custom_call.1
= control target key start
LH: loop header
LB: loop body
LE: loop exit
PB: predicated region body
PF: predicated region fallthrough
CT: control target
= control target key end

     0   :  { %s881_s0 = inlined_call_operand.hbm [shape: f32[2,8,128], index: 0, kind: input, shape index: {}]   ;;  %s882_s1 = inlined_call_operand.hbm [shape: f32[2,4,8,128], index: 1, kind: input, shape index: {}]   ;;  %s883_s2 = inlined_call_operand.hbm [shape: s32[2,8,128], index: 2, kind: output, shape index: {}]  }
   0x1   :  { %885 = sst [smem:[#allocation12_spill]] %s881_s0 }
   0x2   :  { %886 = sst [smem:[#allocation13_spill]] %s882_s1 }
   0x3   :  { %7 = vsyncpa [#allocation5], 0 }
   0x4   :  { %8 = vsyncpa [#allocation3], 0 }
   0x5   :  { %10 = vsyncpa [#allocation3 + $0x1], 0 }
   0x6   :  { %11 = vsyncpa [#allocation4], 0 }
   0x7   :  { %13 = vsyncpa [#allocation4 + $0x1], 0  ;;  %s681_s9 = smov 0   ;;  %s683_s10 = smov 0  }
   0x8   :  { %s685_s11 = smov 0   ;;  %s687_s12 = smov 0  }
   0x9 LB: > { %s702_s13 = sadd.s32 4294967295, %s644_s12   ;;  %s394_s14 = sadd.s32 4294967294, %s644_s12   ;;  %s644_s12 = sphi %s687_s12, %s902_s12   ;;  %s640_s11 = sphi %s685_s11, %s901_s11   ;;  %s636_s10 = sphi %s683_s10, %s900_s10   ;;  %s632_s9 = sphi %s681_s9, %s899_s9  }
   0xa   : > { %887 = sst [smem:[#allocation11_spill]] %s702_s13  ;;  %p60_p0 = scmp.ne.s32.totalorder %s636_s10, %s632_s9 }
   0xb   : > { %p61_p1 = scmp.eq.s32.totalorder %s702_s13, 0  ;;  %p84_p2 = scmp.eq.s32.totalorder %s702_s13, 1 }
   0xc   : > { %p90_p3 = scmp.eq.s32.totalorder %s394_s14, 1  ;;  %p395_p5 = scmp.ge.s32.totalorder %s644_s12, 1 }
   0xd   : > { %p711_p4 = por %p61_p1, %p60_p0  ;;  %p97_p7 = scmp.lt.s32.totalorder %s644_s12, 3 }
   0xe   : > { %p716_p6 = por %p90_p3, %p60_p0  ;;  %s890_s0 = sld [smem:[#allocation12_spill]] }
   0xf   : > { %p724_p8 = pnand %p395_p5, %p97_p7  ;;  %s734_s21 = sadd.s32 1, %s644_s12  }
  0x10   : > { %s47_s22 = sadd.s32 1, %s640_s11  ;;  %s44_s23 = ssub.s32 %s644_s12, %s734_s21 }
  0x11   : > { %p429_p9 = pneg %p724_p8  ;;  %s662_s24 = smov [#allocation2]  }
  0x12   : > { %s663_s25 = smov 128   ;;  %s664_s26 = smov 8  }
  0x13   : > { %p430_p11 = pnand %p429_p9, %p61_p1  ;;  %p45_p12 = scmp.eq.s32.totalorder %s44_s23, 0 }
  0x14   : > { %s108_s19 = sshll.u32 %s890_s0, 4  ;;  %p54_p13 = scmp.ne.s32.totalorder %s640_s11, %s636_s10  ;;  %s109_s19 = int_to_ptr.hbm [resolvable:$true] %s108_s19 }
  0x15   : > { %432 = dma.hbm_to_smem (!%p430_p11), %s109_s19, 256, %s662_s24, [#allocation5], %s663_s25, %s663_s25, %s664_s26  }
  0x16   : > { %p55_p0 = scmp.eq.s32.totalorder %s644_s12, 0  ;;  %p750_p3 = por %p84_p2, %p54_p13 }
  0x17   : > { %s746_s27 = scalar_select %p45_p12, %s640_s11, %s47_s22  }
  0x18   : > { %p442_p5 = scmp.lt.s32.totalorder %s644_s12, 2  ;;  %s122_s29 = sand.u32 1, %s640_s11  }
  0x19   : > { %s416_s30 = sshll.u32 %s644_s12, 5  ;;  %p56_p7 = por %p55_p0, %p54_p13 }
  0x1a   : > { %s398_s3 = sshll.u32 %s122_s29, 5  ;;  %s893_s1 = sld [smem:[#allocation13_spill]] }
  0x1b   : > { %s126_s8 = scalar_lea.vmem [#allocation6], %s398_s3  ;;  %p760_p9 = pnand %p442_p5, %p56_p7 }
  0x1c   : > { %s134_s14 = sshll.u32 %s126_s8, 4  ;;  %s123_s18 = scalar_lea.sflag [#allocation3], %s122_s29  ;;  %s135_s14 = int_to_ptr.vmem [resolvable:$true] %s134_s14 }
  0x1d   : > { %p532_p11 = pneg %p760_p9 }
  0x20   : > { %s131_s6 = scalar_lea.hbm %s893_s1, %s416_s30  ;;  %s535_s30 = scalar_lea.hbm %s893_s1, 64 }
  0x21   : > { %s132_s7 = sshll.u32 %s131_s6, 4  ;;  %s133_s7 = int_to_ptr.hbm [resolvable:$true] %s132_s7 }
  0x22   : > { %s528_s19 = sshra.s32 %s133_s7, 4  ;;  %s529_s19 = int_to_ptr.hbm [resolvable:$true] %s528_s19 }
  0x23   : > { %s530_s22 = scalar_lea.hbm %s529_s19, 32  ;;  %p536_p0 = scmp.lt.s32.totalorder %s529_s19, %s893_s1 }
  0x24   : > { %p531_p2 = scmp.ne.s32.totalorder %s529_s19, %s530_s22  ;;  %p537_p5 = scmp.lt.s32.totalorder %s535_s30, %s530_s22 }
  0x26   : > { %p533_p12 = pnand %p532_p11, %p531_p2  ;;  %p538_p7 = por %p537_p5, %p536_p0 }
  0x28   : > { %p534_p13 = pneg %p533_p12 }
  0x2a   : > { %p539_p10 = pnand %p538_p7, %p534_p13 }
  0x2c   : > { %542 = shalt.err (!%p539_p10)
}
  0x2d   : > { %436 = dma.hbm_to_vmem [thread:$0]  (!%p760_p9), %s133_s7, 512, %s135_s14, %s123_s18, %s663_s25, %s663_s25, %s664_s26  }
  0x2e   : > { %146 = sbr.rel (%p724_p8) target bundleno = 587 (0x24b), region = 28 }
  0x33   : > { %619 = dma.done.wait (%p61_p1), [#allocation5], 256  }
  0x34   : > { %621 = vsyncadd (%p61_p1), [#allocation5], 4294967040  ;;  %s784_s29 = sand.u32 1, %s636_s10  }
  0x35   : > { %s403_s5 = sshll.u32 %s784_s29, 5  ;;  %s154_s6 = scalar_lea.sflag [#allocation3], %s784_s29 }
  0x36   : > { %s157_s8 = scalar_lea.vmem [#allocation6], %s403_s5 }
  0x37   : > { %623 = dma.done.wait (%p711_p4), %s154_s6, 512  }
  0x38   : > { %625 = vsyncadd (%p711_p4), %s154_s6, 4294966784 }
  0x39   : > { %163 = sfence }
  0x3a   : > { %s404_s20 = sshll.u32 %s784_s29, 3  ;;  %v793_v0 = vld [vmem:[%s157_s8] sm:$0xff]  ;;  %v795_v1 = vld [vmem:[%s157_s8 + $0x8] sm:$0xff]  ;;  %v797_v2 = vld [vmem:[%s157_s8 + $0x10] sm:$0xff]  ;;  %v187_v3 = vlaneseq  ;;  %v665_v9 = vmov -inf   ;;  %v806_v11 = vmov 0  }
  0x3b   : > { %v799_v4 = vld [vmem:[%s157_s8 + $0x18] sm:$0xff]  ;;  %s804_s15 = scalar_lea.vmem [#allocation7], %s404_s20  ;;  %s810_s25 = smov 0  }
  0x3c   : > { %v188_v5 = vshrl.u32 %v187_v3, 7  ;;  %v191_v6 = vand.u32 127, %v187_v3  ;;  %s812_s26 = smov 0  }
  0x3e   : > { %v189_v7 = vmul.u32 128, %v188_v5 }
  0x40   : > { %v801_v8 = vadd.s32 %v191_v6, %v189_v7 }
  0x42   : > { %vm193_vm0 = vcmp.lt.s32.totalorder %v801_v8, 64 }
  0x43   : > { %v194_v10 = vsel %vm193_vm0, inf, %v665_v9  }
  0x44 LB: >> { %s895_s13 = sld [smem:[#allocation11_spill]]  ;;  %v204_v12 = vstv %s660_s26  ;;  %v206_v13 = vstv %s656_s25  ;;  %s208_s7 = sshra.s32 %s656_s25, 7  ;;  %s660_s26 = sphi %s812_s26, %s200_s26   ;;  %s656_s25 = sphi %s810_s25, %s420_s25   ;;  %v652_v10 = vphi %v194_v10, %v244_v10   ;;  %v648_v11 = vphi %v806_v11, %v897_v11  }
  0x45   : >> { %vm205_vm1 = vcmp.eq.s32.totalorder %v801_v8, %v204_v12  ;;  %s214_s18 = sand.u32 127, %s656_s25  ;;  %s217_s22 = sadd.s32 1, %s208_s7 }
  0x46   : >> { %v826_v11 = vsel %vm205_vm1, %v206_v13, %v648_v11   ;;  %s222_s5 = sadd.s32 2, %s208_s7  ;;  %s200_s26 = sadd.s32 1, %s660_s26  }
  0x47   : >> { %v896_v14 = vmov %v826_v11  ;;  %p197_p1 = scmp.ge.s32.totalorder %s200_s26, 32  }
  0x48   : >> { %v897_v11 = vmov %v896_v14  ;;  %281 = vst [vmem:[%s804_s15] sm:$0xff] (%p197_p1), %v896_v14 }
  0x4a   : >> { %s822_s14 = sshll.u32 %s895_s13, 3 }
  0x4b   : >> { %s211_s17 = sadd.s32 %s822_s14, %s208_s7  ;;  %s218_s24 = sadd.s32 %s822_s14, %s217_s22 }
  0x4c   : >> { %s409_s19 = sshll.u32 %s211_s17, 7  ;;  %s410_s3 = sshll.u32 %s218_s24, 7 }
  0x4d   : >> { %s215_s23 = sadd.s32 %s409_s19, %s214_s18  ;;  %s220_s4 = sadd.s32 %s410_s3, %s214_s18 }
  0x4e   : >> { %s216_s30 = sld [smem:[#allocation2 + %s215_s23]]  ;;  %s223_s8 = sadd.s32 %s822_s14, %s222_s5 }
  0x4f   : >> { %s221_s6 = sld [smem:[#allocation2 + %s220_s4]]  ;;  %s411_s20 = sshll.u32 %s223_s8, 7 }
  0x50   : >> { %s225_s0 = sadd.s32 %s411_s20, %s214_s18  ;;  %s293_s18 = scalar_lea.hbm (%p197_p1), %s883_s2, %s822_s14 }
  0x51   : >> { %s226_s1 = sld [smem:[#allocation2 + %s225_s0]]  ;;  %s295_s22 = sshll.u32 (%p197_p1), %s804_s15, 4  ;;  %s296_s22 = int_to_ptr.vmem [resolvable:$true] %s295_s22 }
  0x52   : > { %s297_s23 = sshll.u32 (%p197_p1), %s293_s18, 4  ;;  %s283_s24 = scalar_lea.sflag (%p197_p1), [#allocation4], %s784_s29  ;;  %s298_s23 = int_to_ptr.hbm [resolvable:$true] %s297_s23 }
  0x53   : > { %s578_s5 = scalar_lea.hbm (%p197_p1), %s883_s2, 16 }
  0x54   : >> { %s227_s13 = smul.f32 %s216_s30, %s216_s30  ;;  %v228_v15 = vstv %s216_s30  ;;  %s572_s30 = sshra.s32 (%p197_p1), %s298_s23, 4  ;;  %s573_s30 = int_to_ptr.hbm [resolvable:$true] %s572_s30 }
  0x55   : >> { %v229_v16 = vmul.f32 %v228_v15, %v793_v0  ;;  %s230_s25 = smul.f32 %s221_s6, %s221_s6  ;;  %v232_v17 = vstv %s221_s6  ;;  %s574_s26 = scalar_lea.hbm (%p197_p1), %s573_s30, 8 }
  0x56   : >> { %v233_v18 = vmul.f32 %v795_v1, %v232_v17  ;;  %p575_p4 = scmp.ne.s32.totalorder (%p197_p1), %s573_s30, %s574_s26  ;;  %p579_p9 = scmp.lt.s32.totalorder (%p197_p1), %s573_s30, %s883_s2 }
  0x57   : >> { %s231_s17 = sadd.f32 %s230_s25, %s227_s13  ;;  %s235_s19 = smul.f32 %s226_s1, %s226_s1  ;;  %v237_v20 = vstv %s226_s1 }
  0x58   : >> { %v234_v19 = vadd.f32 %v233_v18, %v229_v16  ;;  %v238_v21 = vmul.f32 %v797_v2, %v237_v20  ;;  %p576_p8 = pnand (%p197_p1), %p575_p4, %p750_p3  ;;  %p580_p2 = scmp.lt.s32.totalorder (%p197_p1), %s578_s5, %s574_s26 }
  0x59   : >> { %s236_s7 = sadd.f32 %s235_s19, %s231_s17 }
  0x5a   : >> { %v239_v22 = vadd.f32 %v238_v21, %v234_v19  ;;  %p577_p10 = pneg (%p197_p1), %p576_p8  ;;  %p581_p11 = por (%p197_p1), %p580_p2, %p579_p9 }
  0x5b   : >> { %v242_v24 = vstv %s236_s7 }
  0x5c   : >> { %v240_v23 = vmul.f32 2.0, %v239_v22  ;;  %p582_p12 = pnand (%p197_p1), %p581_p11, %p577_p10 }
  0x5e   : >> { %v241_v25 = vsub.f32 %v799_v4, %v240_v23 }
  0x60   : >> { %v243_v26 = vadd.f32 %v242_v24, %v241_v25 }
  0x62   : >> { %v244_v10 = vmin.f32 %v652_v10, %v243_v26  }
  0x64   : >> { %245 = vmax.xlane.f32.xlu0 %v244_v10 }
  0xd7   : >> { %v246_v27 = vpop.xlane.xlu0 %245 }
  0xd8   : >> { %v247_v28 = vrot.slane %v246_v27, 4 }
  0xda   : >> { %v248_v29 = vmax.f32 %v246_v27, %v247_v28 }
  0xdc   : >> { %v249_v30 = vrot.slane %v248_v29, 2 }
  0xde   : >> { %v250_v31 = vmax.f32 %v248_v29, %v249_v30 }
  0xe0   : >> { %v251_v32 = vrot.slane %v250_v31, 1 }
  0xe2   : >> { %v252_v33 = vmax.f32 %v250_v31, %v251_v32 }
  0xe4   : >> { %417 = vpush %v252_v33 }
 0x115   : >> { %s418_s0 = spop %417 }
 0x116   : >> { %v254_v34 = vstv %s418_s0 }
 0x117   : >> { %vm255_vm2 = vcmp.ge.f32.partialorder %v244_v10, %v254_v34 }
 0x118   : >> { %v256_v35 = vsel %vm255_vm2, %v801_v8, 1024 }
 0x119   : >> { %v258_v36 = vshra.s32 %v256_v35, 16  ;;  %v257_v38 = vand.u32 65535, %v256_v35 }
 0x11b   : >> { %v260_v37 = vcvt.s32.f32 %v258_v36  ;;  %v259_v40 = vcvt.s32.f32 %v257_v38 }
 0x11d   : >> { %261 = vmin.xlane.f32.xlu0 %v260_v37 }
 0x190   : >> { %v262_v39 = vpop.xlane.xlu0 %261 }
 0x191   : >> { %vm263_vm3 = vcmp.eq.f32.partialorder %v260_v37, %v262_v39  ;;  %v268_v42 = vcvt.f32.s32 %v262_v39 }
 0x192   : >> { %v264_v41 = vsel %vm263_vm3, %v259_v40, inf }
 0x193   : >> { %265 = vmin.xlane.f32.xlu1 %v264_v41  ;;  %v269_v44 = vshll.u32 %v268_v42, 16 }
 0x206   : >> { %v266_v43 = vpop.xlane.xlu1 %265 }
 0x207   : >> { %v267_v45 = vcvt.f32.s32 %v266_v43 }
 0x209   : >> { %v270_v46 = vadd.s32 %v269_v44, %v267_v45 }
 0x20b   : >> { %v271_v47 = vrot.slane %v270_v46, 4 }
 0x20d   : >> { %vm272_vm4 = vcmp.lt.s32.totalorder %v270_v46, %v271_v47 }
 0x20e   : >> { %v273_v48 = vsel %vm272_vm4, %v270_v46, %v271_v47 }
 0x20f   : >> { %v274_v49 = vrot.slane %v273_v48, 2 }
 0x211   : >> { %vm275_vm5 = vcmp.lt.s32.totalorder %v273_v48, %v274_v49 }
 0x212   : >> { %v276_v50 = vsel %vm275_vm5, %v273_v48, %v274_v49 }
 0x213   : >> { %v277_v51 = vrot.slane %v276_v50, 1 }
 0x215   : >> { %vm278_vm6 = vcmp.lt.s32.totalorder %v276_v50, %v277_v51 }
 0x216   : >> { %v279_v52 = vsel %vm278_vm6, %v276_v50, %v277_v51 }
 0x217   : >> { %419 = vpush %v279_v52 }
 0x244   : > { %199 = sbr.rel (!%p197_p1) target bundleno = 68 (0x44), region = 88 }
 0x248   : >> { %s420_s25 = spop %419  }
 0x249   : > { %585 = shalt.err (!%p582_p12)
}
 0x24a   : > { %427 = dma.vmem_to_hbm [thread:$0]  (%p750_p3), %s296_s22, 128, %s298_s23, %s283_s24  }
 0x24b PF: > { %s309_s29 = sand.u32 1, %s632_s9   ;;  %p898_p13 = scmp.ge.s32.totalorder %s644_s12, 2 }
 0x24c   : > { %s310_s15 = scalar_lea.sflag [#allocation4], %s309_s29 }
 0x24d   : > { %p438_p0 = pnand %p898_p13, %p716_p6 }
 0x24f   : > { %p439_p5 = pneg %p438_p0 }
 0x251   : > { %627 = dma.done.wait (%p439_p5), %s310_s15, 128  }
 0x252   : > { %629 = vsyncadd (%p439_p5), %s310_s15, 4294967168  ;;  %p16_p7 = scmp.ge.s32.totalorder %s734_s21, 4   ;;  %s899_s9 = smov %s636_s10 }
 0x253   : > { %s900_s10 = smov %s640_s11  ;;  %s901_s11 = smov %s746_s27 }
 0x254   : > { %s902_s12 = smov %s734_s21  ;;  %18 = sbr.rel (!%p16_p7) target bundleno = 9 (0x9), region = 99 }
 0x259   :  { %316 = vsyncpa [#allocation3], 1 }
 0x25a   :  { %318 = vsyncpa [#allocation3 + $0x1], 1 }
 0x25b   :  { %319 = vsyncpa [#allocation4], 1 }
 0x25c   :  { %321 = vsyncpa [#allocation4 + $0x1], 1 }
 0x25d   :  { %322 = vsyncpa [#allocation5], 1 }
 0x25e   :  { %324 = vsyncpa [#allocation5 + $0x1], 1 }

</bundles_post_ra>
